<compile_context>
chip_gen: v7x
topology: tpu7x:2x2x1
jax: 0.10.0
libtpu: 0.0.40
codegen_flags: <defaults>
</compile_context>

<pallas_src>
import functools

import numpy as np
import jax
import jax.numpy as jnp
from jax.experimental import pallas as pl
from jax.experimental.pallas import tpu as pltpu

# ---------------- model dimensions (small, deterministic) ----------------
N_BATCH, C_IN, H_IN, W_IN = 2, 4, 16, 16
C1, C2 = 8, 16
POOL_OUT = 20            # scaled-down analog of 1280 (output > input spatial, like 1280 > 7)
NUM_CLASSES = 10


# ---------------- Pallas kernel: fused matmul + bias + optional SiLU ----------------
def _matmul_bias_act_kernel(a_ref, b_ref, bias_ref, o_ref, acc_ref, *, act):
    k = pl.program_id(1)

    @pl.when(k == 0)
    def _init():
        acc_ref[...] = jnp.zeros_like(acc_ref)

    acc_ref[...] += jnp.dot(a_ref[...], b_ref[...], preferred_element_type=jnp.float32)

    @pl.when(k == pl.num_programs(1) - 1)
    def _finalize():
        acc = acc_ref[...] + bias_ref[...].astype(jnp.float32)
        if act == "silu":
            acc = acc * jax.nn.sigmoid(acc)
        o_ref[...] = acc.astype(o_ref.dtype)


def matmul_bias_act(a, b, bias2d, *, act=None, out_dtype=jnp.float32,
                    tile_n=None, tile_k=None):
    """a (M,K) @ b (K,N) + bias2d [+ SiLU] on the MXU.

    Operands are cast to bf16; accumulation is f32 in a VMEM scratch.
    bias2d: (M, 1) (per-row bias) or (1, N) (per-column bias), f32.
    Grid: (N-blocks 'parallel', K-blocks 'arbitrary').
    """
    M, K = a.shape
    K2, N = b.shape
    assert K == K2, (a.shape, b.shape)

    a = a.astype(jnp.bfloat16)
    b = b.astype(jnp.bfloat16)
    bias2d = bias2d.astype(jnp.float32)

    tn = tile_n if (tile_n is not None and N % tile_n == 0 and N > tile_n) else N
    tk = tile_k if (tile_k is not None and K % tile_k == 0 and K > tile_k) else K
    nn, nk = N // tn, K // tk

    if bias2d.shape == (M, 1):
        bias_spec = pl.BlockSpec((M, 1), lambda n, k: (0, 0))
    elif bias2d.shape == (1, N):
        bias_spec = pl.BlockSpec((1, tn), lambda n, k: (0, n))
    else:
        raise ValueError(f"bias2d must be (M,1) or (1,N), got {bias2d.shape}")

    cost = pl.CostEstimate(
        flops=2 * M * N * K,
        transcendentals=(M * N) if act == "silu" else 0,
        bytes_accessed=(a.size * 2 + b.size * 2 + bias2d.size * 4
                        + M * N * jnp.dtype(out_dtype).itemsize),
    )

    kernel = functools.partial(_matmul_bias_act_kernel, act=act)
    return pl.pallas_call(
        kernel,
        grid=(nn, nk),
        in_specs=[
            pl.BlockSpec((M, tk), lambda n, k: (0, k)),
            pl.BlockSpec((tk, tn), lambda n, k: (k, n)),
            bias_spec,
        ],
        out_specs=pl.BlockSpec((M, tn), lambda n, k: (0, n)),
        out_shape=jax.ShapeDtypeStruct((M, N), out_dtype),
        scratch_shapes=[pltpu.VMEM((M, tn), jnp.float32)],
        compiler_params=pltpu.CompilerParams(
            dimension_semantics=("parallel", "arbitrary")),
        cost_estimate=cost,
    )(a, b, bias2d)


# ---------------- conv block: transposed im2col + Pallas matmul ----------------
def conv3x3_silu(x_cnhw, w, b, *, tile_n=256):
    """x_cnhw: (Cin, N, H, W); w: (Cout, Cin, 3, 3); b: (Cout,). stride 1, pad 1, SiLU.

    im2col is emitted directly in the transposed (Cin*9, N*H*W) orientation so the Pallas
    matmul output (Cout, N*H*W) is lane-dense and no post-matmul transpose is needed.
    """
    # TODO(synk): at production shapes, move im2col into the kernel (tap grid axis with
    # shifted-window index_map + VMEM accumulator) to avoid the 9x HBM patches blow-up.
    cin, n, h, wd = x_cnhw.shape
    cout = w.shape[0]
    xp = jnp.pad(x_cnhw, ((0, 0), (0, 0), (1, 1), (1, 1)))
    taps = [xp[:, :, kh:kh + h, kw:kw + wd] for kh in range(3) for kw in range(3)]
    patches = jnp.stack(taps, axis=1).reshape(cin * 9, n * h * wd)   # (Cin*9, N*H*W)
    w_mat = w.reshape(cout, cin * 9)                                 # matches (ci, kh, kw) order
    y = matmul_bias_act(w_mat, patches, b.reshape(cout, 1),
                        act="silu", out_dtype=jnp.bfloat16, tile_n=tile_n)
    return y.reshape(cout, n, h, wd)


# ---------------- adaptive_avg_pool2d folded into the FC weight ----------------
def _adaptive_pool_matrix(in_size, out_size):
    m = np.zeros((out_size, in_size), dtype=np.float32)
    for o in range(out_size):
        start = (o * in_size) // out_size
        end = -(-((o + 1) * in_size) // out_size)      # ceil
        m[o, start:end] = 1.0 / (end - start)
    return jnp.asarray(m)


def fuse_pool_into_fc(w_fc, c, h, w, pool_out):
    """Fold F.adaptive_avg_pool2d(., (pool_out, pool_out)) + Flatten into the FC weight.

    w_fc: (num_classes, c*pool_out*pool_out), column order (c, oh, ow).
    Returns (num_classes, c*h*w), column order (c, h, w).  Exact (both ops are linear).
    """
    mh = _adaptive_pool_matrix(h, pool_out)            # (Ho, H)
    mw = _adaptive_pool_matrix(w, pool_out)            # (Wo, W)
    k = w_fc.shape[0]
    w_r = w_fc.reshape(k, c, pool_out, pool_out)
    w_eff = jnp.einsum("kcop,oh,pw->kchw", w_r, mh, mw)
    return w_eff.reshape(k, c * h * w)


# ---------------- full forward ----------------
def efficientnet_cam_forward(params, x_nchw):
    # NCHW -> internal (C, N, H, W) layout, bf16 activations (halves HBM traffic).
    x = x_nchw.transpose(1, 0, 2, 3).astype(jnp.bfloat16)

    x = conv3x3_silu(x, params["w1"], params["b1"])            # first_part_conv
    # TODO(synk): x.register_hook(self.activations_hook) is a backward-pass hook; no forward effect.
    x = conv3x3_silu(x, params["w2"], params["b2"])            # second_part_conv

    # F.adaptive_avg_pool2d(x, (POOL_OUT, POOL_OUT)) + Flatten + Linear fused into one matmul.
    c2, n, h, w = x.shape
    w_fc_eff = fuse_pool_into_fc(params["w_fc"], c2, h, w, POOL_OUT)   # (classes, C2*H*W)
    x_flat = x.transpose(1, 0, 2, 3).reshape(n, c2 * h * w)            # (N, C2*H*W), (c,h,w) order
    logits = matmul_bias_act(x_flat, w_fc_eff.T,
                             params["b_fc"].reshape(1, NUM_CLASSES),
                             act=None, out_dtype=jnp.float32, tile_k=2048)
    return logits


# ---------------- pure-JAX f32 reference (for correctness check only) ----------------
def reference_forward(params, x):
    def conv_ref(x, w, b):
        y = jax.lax.conv_general_dilated(
            x, w, window_strides=(1, 1), padding=((1, 1), (1, 1)),
            dimension_numbers=("NCHW", "OIHW", "NCHW"))
        y = y + b[None, :, None, None]
        return y * jax.nn.sigmoid(y)

    x = conv_ref(x, params["w1"], params["b1"])
    x = conv_ref(x, params["w2"], params["b2"])
    mh = _adaptive_pool_matrix(x.shape[2], POOL_OUT)
    mw = _adaptive_pool_matrix(x.shape[3], POOL_OUT)
    x = jnp.einsum("oh,nchw,pw->ncop", mh, x, mw)
    x = x.reshape(x.shape[0], -1)
    return x @ params["w_fc"].T + params["b_fc"]


if __name__ == "__main__":
    key = jax.random.PRNGKey(0)
    k1, k2, k3, k4, k5, k6, kx = jax.random.split(key, 7)
    feat_dim = C2 * POOL_OUT * POOL_OUT
    params = {
        "w1": 0.1 * jax.random.normal(k1, (C1, C_IN, 3, 3), jnp.float32),
        "b1": 0.1 * jax.random.normal(k2, (C1,), jnp.float32),
        "w2": 0.1 * jax.random.normal(k3, (C2, C1, 3, 3), jnp.float32),
        "b2": 0.1 * jax.random.normal(k4, (C2,), jnp.float32),
        "w_fc": 0.05 * jax.random.normal(k5, (NUM_CLASSES, feat_dim), jnp.float32),
        "b_fc": 0.05 * jax.random.normal(k6, (NUM_CLASSES,), jnp.float32),
    }
    x = jax.random.normal(kx, (N_BATCH, C_IN, H_IN, W_IN), jnp.float32)

    fwd = jax.jit(efficientnet_cam_forward)
    out = jax.block_until_ready(fwd(params, x))
    assert out.shape == (N_BATCH, NUM_CLASSES)
    assert jnp.all(jnp.isfinite(out))

    ref = jax.block_until_ready(reference_forward(params, x))
    # bf16 matmul operands vs f32 reference -> modest tolerance (accumulation is f32 in-kernel).
    err = jnp.max(jnp.abs(out - ref))
    assert jnp.allclose(out, ref, rtol=7.5e-2, atol=1e-1), (float(err), out, ref)

    print("KERNEL_OK")
</pallas_src>

<mosaic_0001>
module attributes {stable_mosaic.version = 11 : i64} {
  func.func @_matmul_bias_act_kernel(%arg0: i32, %arg1: i32, %arg2: memref<8x36xbf16, #tpu.memory_space<vmem>>, %arg3: memref<36x256xbf16, #tpu.memory_space<vmem>>, %arg4: memref<8x1xf32, #tpu.memory_space<vmem>>, %arg5: memref<8x256xbf16, #tpu.memory_space<vmem>>, %arg6: memref<8x256xf32, #tpu.memory_space<vmem>>) attributes {dimension_semantics = [#tpu.dimension_semantics<parallel>, #tpu.dimension_semantics<arbitrary>], iteration_bounds = array<i64: 2, 1>, scalar_prefetch = 0 : i64, scratch_operands = 1 : i64, tpu.core_type = #tpu.core_type<tc>, window_params = [{transform_indices = @transform_0, window_bounds = array<i64: 8, 36>}, {transform_indices = @transform_1, window_bounds = array<i64: 36, 256>}, {pipeline_mode = #tpu.pipeline_mode<synchronous>, transform_indices = @transform_2, window_bounds = array<i64: 8, 1>}, {transform_indices = @transform_3, window_bounds = array<i64: 8, 256>}]} {
    %c0_i32 = arith.constant 0 : i32
    %0 = arith.cmpi eq, %arg1, %c0_i32 : i32
    %1 = arith.extui %0 : i1 to i32
    %c0_i32_0 = arith.constant 0 : i32
    %2 = arith.cmpi ne, %1, %c0_i32_0 : i32
    scf.if %2 {
      %cst_10 = arith.constant 0.000000e+00 : f32
      %12 = vector.broadcast %cst_10 : f32 to vector<8x256xf32>
      %c0_11 = arith.constant 0 : index
      %c0_12 = arith.constant 0 : index
      %13 = vector.load %arg6[%c0_11, %c0_12] : memref<8x256xf32, #tpu.memory_space<vmem>>, vector<8x256xf32>
      tpu.vector_store %arg6[%c0_11, %c0_12], %12 {strides = array<i32>} : memref<8x256xf32, #tpu.memory_space<vmem>>, vector<8x256xf32>,
    } else {
    }
    %c0 = arith.constant 0 : index
    %c0_1 = arith.constant 0 : index
    %3 = vector.load %arg6[%c0, %c0_1] : memref<8x256xf32, #tpu.memory_space<vmem>>, vector<8x256xf32>
    %c0_2 = arith.constant 0 : index
    %c0_3 = arith.constant 0 : index
    %4 = vector.load %arg2[%c0_2, %c0_3] : memref<8x36xbf16, #tpu.memory_space<vmem>>, vector<8x36xbf16>
    %c0_4 = arith.constant 0 : index
    %c0_5 = arith.constant 0 : index
    %5 = vector.load %arg3[%c0_4, %c0_5] : memref<36x256xbf16, #tpu.memory_space<vmem>>, vector<36x256xbf16>
    %cst = arith.constant dense<0.000000e+00> : vector<8x256xf32>
    %6 = tpu.matmul %4, %5, %cst {dimension_numbers = #tpu.dot_dimension_numbers<[1], [0], [0], [1], [0, 0, 1, 1], [], []>} : vector<8x36xbf16>, vector<36x256xbf16>, vector<8x256xf32> -> vector<8x256xf32>
    %7 = arith.addf %3, %6 : vector<8x256xf32>
    %c0_6 = arith.constant 0 : index
    %c0_7 = arith.constant 0 : index
    %8 = vector.load %arg6[%c0_6, %c0_7] : memref<8x256xf32, #tpu.memory_space<vmem>>, vector<8x256xf32>
    tpu.vector_store %arg6[%c0_6, %c0_7], %7 {strides = array<i32>} : memref<8x256xf32, #tpu.memory_space<vmem>>, vector<8x256xf32>,
    %c0_i32_8 = arith.constant 0 : i32
    %9 = arith.cmpi eq, %arg1, %c0_i32_8 : i32
    %10 = arith.extui %9 : i1 to i32
    %c0_i32_9 = arith.constant 0 : i32
    %11 = arith.cmpi ne, %10, %c0_i32_9 : i32
    scf.if %11 {
      %c0_10 = arith.constant 0 : index
      %c0_11 = arith.constant 0 : index
      %12 = vector.load %arg6[%c0_10, %c0_11] : memref<8x256xf32, #tpu.memory_space<vmem>>, vector<8x256xf32>
      %c0_12 = arith.constant 0 : index
      %c0_13 = arith.constant 0 : index
      %13 = vector.load %arg4[%c0_12, %c0_13] : memref<8x1xf32, #tpu.memory_space<vmem>>, vector<8x1xf32>
      %14 = vector.broadcast %13 : vector<8x1xf32> to vector<8x256xf32>
      %15 = arith.addf %12, %14 : vector<8x256xf32>
      %16 = arith.negf %15 : vector<8x256xf32>
      %17 = math.exp %16 : vector<8x256xf32>
      %cst_14 = arith.constant 1.000000e+00 : f32
      %18 = vector.broadcast %cst_14 : f32 to vector<8x256xf32>
      %19 = arith.addf %18, %17 : vector<8x256xf32>
      %20 = arith.divf %18, %19 : vector<8x256xf32>
      %21 = arith.mulf %15, %20 : vector<8x256xf32>
      %22 = arith.truncf %21 : vector<8x256xf32> to vector<8x256xbf16>
      %c0_15 = arith.constant 0 : index
      %c0_16 = arith.constant 0 : index
      %23 = vector.load %arg5[%c0_15, %c0_16] : memref<8x256xbf16, #tpu.memory_space<vmem>>, vector<8x256xbf16>
      tpu.vector_store %arg5[%c0_15, %c0_16], %22 {strides = array<i32>} : memref<8x256xbf16, #tpu.memory_space<vmem>>, vector<8x256xbf16>,
    } else {
    }
    return
  }
  func.func @transform_0(%arg0: i32, %arg1: i32) -> (i32, i32) {
    %c0_i32 = arith.constant 0 : i32
    %c0_i32_0 = arith.constant 0 : i32
    return %c0_i32, %arg1 : i32, i32
  }
  func.func @transform_1(%arg0: i32, %arg1: i32) -> (i32, i32) {
    %c0_i32 = arith.constant 0 : i32
    return %arg1, %arg0 : i32, i32
  }
  func.func @transform_2(%arg0: i32, %arg1: i32) -> (i32, i32) {
    %c0_i32 = arith.constant 0 : i32
    %c0_i32_0 = arith.constant 0 : i32
    %c0_i32_1 = arith.constant 0 : i32
    return %c0_i32, %c0_i32_0 : i32, i32
  }
  func.func @transform_3(%arg0: i32, %arg1: i32) -> (i32, i32) {
    %c0_i32 = arith.constant 0 : i32
    %c0_i32_0 = arith.constant 0 : i32
    return %c0_i32, %arg0 : i32, i32
  }
}

module attributes {stable_mosaic.version = 11 : i64} {
  func.func @_matmul_bias_act_kernel(%arg0: i32, %arg1: i32, %arg2: memref<16x72xbf16, #tpu.memory_space<vmem>>, %arg3: memref<72x256xbf16, #tpu.memory_space<vmem>>, %arg4: memref<16x1xf32, #tpu.memory_space<vmem>>, %arg5: memref<16x256xbf16, #tpu.memory_space<vmem>>, %arg6: memref<16x256xf32, #tpu.memory_space<vmem>>) attributes {dimension_semantics = [#tpu.dimension_semantics<parallel>, #tpu.dimension_semantics<arbitrary>], iteration_bounds = array<i64: 2, 1>, scalar_prefetch = 0 : i64, scratch_operands = 1 : i64, tpu.core_type = #tpu.core_type<tc>, window_params = [{transform_indices = @transform_0, window_bounds = array<i64: 16, 72>}, {transform_indices = @transform_1, window_bounds = array<i64: 72, 256>}, {pipeline_mode = #tpu.pipeline_mode<synchronous>, transform_indices = @transform_2, window_bounds = array<i64: 16, 1>}, {transform_indices = @transform_3, window_bounds = array<i64: 16, 256>}]} {
    %c0_i32 = arith.constant 0 : i32
    %0 = arith.cmpi eq, %arg1, %c0_i32 : i32
    %1 = arith.extui %0 : i1 to i32
    %c0_i32_0 = arith.constant 0 : i32
    %2 = arith.cmpi ne, %1, %c0_i32_0 : i32
    scf.if %2 {
      %cst_10 = arith.constant 0.000000e+00 : f32
      %12 = vector.broadcast %cst_10 : f32 to vector<16x256xf32>
      %c0_11 = arith.constant 0 : index
      %c0_12 = arith.constant 0 : index
      %13 = vector.load %arg6[%c0_11, %c0_12] : memref<16x256xf32, #tpu.memory_space<vmem>>, vector<16x256xf32>
      tpu.vector_store %arg6[%c0_11, %c0_12], %12 {strides = array<i32>} : memref<16x256xf32, #tpu.memory_space<vmem>>, vector<16x256xf32>,
    } else {
    }
    %c0 = arith.constant 0 : index
    %c0_1 = arith.constant 0 : index
    %3 = vector.load %arg6[%c0, %c0_1] : memref<16x256xf32, #tpu.memory_space<vmem>>, vector<16x256xf32>
    %c0_2 = arith.constant 0 : index
    %c0_3 = arith.constant 0 : index
    %4 = vector.load %arg2[%c0_2, %c0_3] : memref<16x72xbf16, #tpu.memory_space<vmem>>, vector<16x72xbf16>
    %c0_4 = arith.constant 0 : index
    %c0_5 = arith.constant 0 : index
    %5 = vector.load %arg3[%c0_4, %c0_5] : memref<72x256xbf16, #tpu.memory_space<vmem>>, vector<72x256xbf16>
    %cst = arith.constant dense<0.000000e+00> : vector<16x256xf32>
    %6 = tpu.matmul %4, %5, %cst {dimension_numbers = #tpu.dot_dimension_numbers<[1], [0], [0], [1], [0, 0, 1, 1], [], []>} : vector<16x72xbf16>, vector<72x256xbf16>, vector<16x256xf32> -> vector<16x256xf32>
    %7 = arith.addf %3, %6 : vector<16x256xf32>
    %c0_6 = arith.constant 0 : index
    %c0_7 = arith.constant 0 : index
    %8 = vector.load %arg6[%c0_6, %c0_7] : memref<16x256xf32, #tpu.memory_space<vmem>>, vector<16x256xf32>
    tpu.vector_store %arg6[%c0_6, %c0_7], %7 {strides = array<i32>} : memref<16x256xf32, #tpu.memory_space<vmem>>, vector<16x256xf32>,
    %c0_i32_8 = arith.constant 0 : i32
    %9 = arith.cmpi eq, %arg1, %c0_i32_8 : i32
    %10 = arith.extui %9 : i1 to i32
    %c0_i32_9 = arith.constant 0 : i32
    %11 = arith.cmpi ne, %10, %c0_i32_9 : i32
    scf.if %11 {
      %c0_10 = arith.constant 0 : index
      %c0_11 = arith.constant 0 : index
      %12 = vector.load %arg6[%c0_10, %c0_11] : memref<16x256xf32, #tpu.memory_space<vmem>>, vector<16x256xf32>
      %c0_12 = arith.constant 0 : index
      %c0_13 = arith.constant 0 : index
      %13 = vector.load %arg4[%c0_12, %c0_13] : memref<16x1xf32, #tpu.memory_space<vmem>>, vector<16x1xf32>
      %14 = vector.broadcast %13 : vector<16x1xf32> to vector<16x256xf32>
      %15 = arith.addf %12, %14 : vector<16x256xf32>
      %16 = arith.negf %15 : vector<16x256xf32>
      %17 = math.exp %16 : vector<16x256xf32>
      %cst_14 = arith.constant 1.000000e+00 : f32
      %18 = vector.broadcast %cst_14 : f32 to vector<16x256xf32>
      %19 = arith.addf %18, %17 : vector<16x256xf32>
      %20 = arith.divf %18, %19 : vector<16x256xf32>
      %21 = arith.mulf %15, %20 : vector<16x256xf32>
      %22 = arith.truncf %21 : vector<16x256xf32> to vector<16x256xbf16>
      %c0_15 = arith.constant 0 : index
      %c0_16 = arith.constant 0 : index
      %23 = vector.load %arg5[%c0_15, %c0_16] : memref<16x256xbf16, #tpu.memory_space<vmem>>, vector<16x256xbf16>
      tpu.vector_store %arg5[%c0_15, %c0_16], %22 {strides = array<i32>} : memref<16x256xbf16, #tpu.memory_space<vmem>>, vector<16x256xbf16>,
    } else {
    }
    return
  }
  func.func @transform_0(%arg0: i32, %arg1: i32) -> (i32, i32) {
    %c0_i32 = arith.constant 0 : i32
    %c0_i32_0 = arith.constant 0 : i32
    return %c0_i32, %arg1 : i32, i32
  }
  func.func @transform_1(%arg0: i32, %arg1: i32) -> (i32, i32) {
    %c0_i32 = arith.constant 0 : i32
    return %arg1, %arg0 : i32, i32
  }
  func.func @transform_2(%arg0: i32, %arg1: i32) -> (i32, i32) {
    %c0_i32 = arith.constant 0 : i32
    %c0_i32_0 = arith.constant 0 : i32
    %c0_i32_1 = arith.constant 0 : i32
    return %c0_i32, %c0_i32_0 : i32, i32
  }
  func.func @transform_3(%arg0: i32, %arg1: i32) -> (i32, i32) {
    %c0_i32 = arith.constant 0 : i32
    %c0_i32_0 = arith.constant 0 : i32
    return %c0_i32, %arg0 : i32, i32
  }
}

module attributes {stable_mosaic.version = 11 : i64} {
  func.func @_matmul_bias_act_kernel(%arg0: i32, %arg1: i32, %arg2: memref<2x2048xbf16, #tpu.memory_space<vmem>>, %arg3: memref<2048x10xbf16, #tpu.memory_space<vmem>>, %arg4: memref<1x10xf32, #tpu.memory_space<vmem>>, %arg5: memref<2x10xf32, #tpu.memory_space<vmem>>, %arg6: memref<2x10xf32, #tpu.memory_space<vmem>>) attributes {dimension_semantics = [#tpu.dimension_semantics<parallel>, #tpu.dimension_semantics<arbitrary>], iteration_bounds = array<i64: 1, 2>, scalar_prefetch = 0 : i64, scratch_operands = 1 : i64, tpu.core_type = #tpu.core_type<tc>, window_params = [{transform_indices = @transform_0, window_bounds = array<i64: 2, 2048>}, {transform_indices = @transform_1, window_bounds = array<i64: 2048, 10>}, {transform_indices = @transform_2, window_bounds = array<i64: 1, 10>}, {transform_indices = @transform_3, window_bounds = array<i64: 2, 10>}]} {
    %c0_i32 = arith.constant 0 : i32
    %0 = arith.cmpi eq, %arg1, %c0_i32 : i32
    %1 = arith.extui %0 : i1 to i32
    %c0_i32_0 = arith.constant 0 : i32
    %2 = arith.cmpi ne, %1, %c0_i32_0 : i32
    scf.if %2 {
      %cst_9 = arith.constant 0.000000e+00 : f32
      %12 = vector.broadcast %cst_9 : f32 to vector<2x10xf32>
      %c0_10 = arith.constant 0 : index
      %c0_11 = arith.constant 0 : index
      %13 = vector.load %arg6[%c0_10, %c0_11] : memref<2x10xf32, #tpu.memory_space<vmem>>, vector<2x10xf32>
      tpu.vector_store %arg6[%c0_10, %c0_11], %12 {strides = array<i32>} : memref<2x10xf32, #tpu.memory_space<vmem>>, vector<2x10xf32>,
    } else {
    }
    %c0 = arith.constant 0 : index
    %c0_1 = arith.constant 0 : index
    %3 = vector.load %arg6[%c0, %c0_1] : memref<2x10xf32, #tpu.memory_space<vmem>>, vector<2x10xf32>
    %c0_2 = arith.constant 0 : index
    %c0_3 = arith.constant 0 : index
    %4 = vector.load %arg2[%c0_2, %c0_3] : memref<2x2048xbf16, #tpu.memory_space<vmem>>, vector<2x2048xbf16>
    %c0_4 = arith.constant 0 : index
    %c0_5 = arith.constant 0 : index
    %5 = vector.load %arg3[%c0_4, %c0_5] : memref<2048x10xbf16, #tpu.memory_space<vmem>>, vector<2048x10xbf16>
    %cst = arith.constant dense<0.000000e+00> : vector<2x10xf32>
    %6 = tpu.matmul %4, %5, %cst {dimension_numbers = #tpu.dot_dimension_numbers<[1], [0], [0], [1], [0, 0, 1, 1], [], []>} : vector<2x2048xbf16>, vector<2048x10xbf16>, vector<2x10xf32> -> vector<2x10xf32>
    %7 = arith.addf %3, %6 : vector<2x10xf32>
    %c0_6 = arith.constant 0 : index
    %c0_7 = arith.constant 0 : index
    %8 = vector.load %arg6[%c0_6, %c0_7] : memref<2x10xf32, #tpu.memory_space<vmem>>, vector<2x10xf32>
    tpu.vector_store %arg6[%c0_6, %c0_7], %7 {strides = array<i32>} : memref<2x10xf32, #tpu.memory_space<vmem>>, vector<2x10xf32>,
    %c1_i32 = arith.constant 1 : i32
    %9 = arith.cmpi eq, %arg1, %c1_i32 : i32
    %10 = arith.extui %9 : i1 to i32
    %c0_i32_8 = arith.constant 0 : i32
    %11 = arith.cmpi ne, %10, %c0_i32_8 : i32
    scf.if %11 {
      %c0_9 = arith.constant 0 : index
      %c0_10 = arith.constant 0 : index
      %12 = vector.load %arg6[%c0_9, %c0_10] : memref<2x10xf32, #tpu.memory_space<vmem>>, vector<2x10xf32>
      %c0_11 = arith.constant 0 : index
      %c0_12 = arith.constant 0 : index
      %13 = vector.load %arg4[%c0_11, %c0_12] : memref<1x10xf32, #tpu.memory_space<vmem>>, vector<1x10xf32>
      %14 = vector.broadcast %13 : vector<1x10xf32> to vector<2x10xf32>
      %15 = arith.addf %12, %14 : vector<2x10xf32>
      %c0_13 = arith.constant 0 : index
      %c0_14 = arith.constant 0 : index
      %16 = vector.load %arg5[%c0_13, %c0_14] : memref<2x10xf32, #tpu.memory_space<vmem>>, vector<2x10xf32>
      tpu.vector_store %arg5[%c0_13, %c0_14], %15 {strides = array<i32>} : memref<2x10xf32, #tpu.memory_space<vmem>>, vector<2x10xf32>,
    } else {
    }
    return
  }
  func.func @transform_0(%arg0: i32, %arg1: i32) -> (i32, i32) {
    %c0_i32 = arith.constant 0 : i32
    %c0_i32_0 = arith.constant 0 : i32
    return %c0_i32, %arg1 : i32, i32
  }
  func.func @transform_1(%arg0: i32, %arg1: i32) -> (i32, i32) {
    %c0_i32 = arith.constant 0 : i32
    return %arg1, %arg0 : i32, i32
  }
  func.func @transform_2(%arg0: i32, %arg1: i32) -> (i32, i32) {
    %c0_i32 = arith.constant 0 : i32
    %c0_i32_0 = arith.constant 0 : i32
    return %c0_i32, %arg0 : i32, i32
  }
  func.func @transform_3(%arg0: i32, %arg1: i32) -> (i32, i32) {
    %c0_i32 = arith.constant 0 : i32
    %c0_i32_0 = arith.constant 0 : i32
    return %c0_i32, %arg0 : i32, i32
  }
}

</mosaic_0001>

<bundles_post_ra>
// kernel: efficientnet_cam_forward.3
= control target key start
LH: loop header
LB: loop body
LE: loop exit
PB: predicated region body
PF: predicated region fallthrough
CT: control target
= control target key end

     0   :  { %s626_s12 = smov 0   ;;  %s628_s13 = smov 0   ;;  %s697_s0 = inlined_call_operand.vmem [shape: bf16[8,36], index: 0, kind: input, shape index: {}]   ;;  %s698_s1 = inlined_call_operand.vmem [shape: bf16[36,512], index: 1, kind: input, shape index: {}]   ;;  %s699_s2 = inlined_call_operand.vmem [shape: f32[8,1], index: 2, kind: input, shape index: {}]   ;;  %s700_s3 = inlined_call_operand.vmem [shape: bf16[8,512], index: 3, kind: output, shape index: {}]  }
   0x1   :  { %s630_s14 = smov 0   ;;  %s632_s15 = smov 0  }
   0x2   :  { %s634_s16 = smov 0  }
   0x3 LB: > { %s25_s17 = sadd.s32 1, %s599_s15  ;;  %p67_p1 = scmp.ne.s32.totalorder %s591_s13, %s587_s12  ;;  %s603_s16 = sphi %s634_s16, %s13_s16   ;;  %s599_s15 = sphi %s632_s15, %s704_s15   ;;  %s595_s14 = sphi %s630_s14, %s703_s14   ;;  %s591_s13 = sphi %s628_s13, %s702_s13   ;;  %s587_s12 = sphi %s626_s12, %s701_s12  }
   0x4   : > { %p27_p0 = scmp.ge.s32.totalorder %s25_s17, 2  ;;  %p68_p2 = scmp.eq.s32.totalorder %s603_s16, 0 }
   0x5   : > { %s60_s19 = sadd.s32 1, %s591_s13  ;;  %p484_p5 = scmp.ge.s32.totalorder %s603_s16, 2 }
   0x6   : > { %s706_s17 = smov (%p27_p0, %s25_s17), 0  ;;  %p69_p3 = por %p68_p2, %p67_p1 }
   0x7   : > { %s56_s18 = ssub.s32 %s599_s15, %s706_s17  ;;  %150 = sbr.rel (%p484_p5) target bundleno = 21 (0x15), region = 24 }
   0x8   : > { %p58_p4 = scmp.eq.s32.totalorder %s56_s18, 0 }
   0xa   : > { %s661_s20 = scalar_select %p58_p4, %s591_s13, %s60_s19  }
   0xe   : > { %153 = sbr.rel (!%p69_p3) target bundleno = 21 (0x15), region = 28  ;;  %s155_s21 = sand.u32 (%p69_p3), 1, %s591_s13  }
   0xf   : > { %s503_s22 = sshll.u32 (%p69_p3), %s599_s15, 3  ;;  %s505_s23 = smul.u32 (%p69_p3), 40, %s155_s21 }
  0x10   : > { %s163_s26 = scalar_lea.vmem (%p69_p3), %s698_s1, %s503_s22 }
  0x11   : > { %v199_v0 = vld [vmem:[%s163_s26] sm:$0xff] (%p69_p3)  ;;  %v201_v1 = vld [vmem:[%s163_s26 + $0x10] sm:$0xff] (%p69_p3)  ;;  %s157_s27 = scalar_lea.vmem (%p69_p3), [#allocation3], %s505_s23 }
  0x12   : > { %v203_v2 = vld [vmem:[%s163_s26 + $0x20] sm:$0xff] (%p69_p3)  ;;  %v205_v3 = vld [vmem:[%s163_s26 + $0x30] sm:$0xff] (%p69_p3)  ;;  %200 = vst [vmem:[%s157_s27] sm:$0xff] (%p69_p3), %v199_v0  ;;  %202 = vst [vmem:[%s157_s27 + $0x8] sm:$0xff] (%p69_p3), %v201_v1 }
  0x13   : > { %v207_v4 = vld [vmem:[%s163_s26 + $0x40] sm:$0xff] (%p69_p3)  ;;  %204 = vst [vmem:[%s157_s27 + $0x10] sm:$0xff] (%p69_p3), %v203_v2  ;;  %206 = vst [vmem:[%s157_s27 + $0x18] sm:$0xff] (%p69_p3), %v205_v3 }
  0x14   : > { %208 = vst [vmem:[%s157_s27 + $0x20] sm:$0xff] (%p69_p3), %v207_v4 }
  0x15 PF: > { %p487_p6 = scmp.ge.s32.totalorder %s603_s16, 1  ;;  %p213_p7 = scmp.lt.s32.totalorder %s603_s16, 3 }
  0x17   : > { %p214_p8 = pnand %p487_p6, %p213_p7 }
  0x18   : > { %s220_s28 = sand.u32 (!%p214_p8), 1, %s587_s12   ;;  %v605_v5 = vmov (!%p214_p8), 0   ;;  %v360_v6 = vld [vmem:[%s699_s2] sm:$0xff] (!%p214_p8)  ;;  %vm303_vm0 = vcmask (!%p214_p8), 1041408   ;;  %vm299_vm1 = vcmask (!%p214_p8), 293888   ;;  %s488_s8 = sshll.u32 (!%p214_p8), %s595_s14, 1 }
  0x19   : > { %217 = sbr.rel (%p214_p8) target bundleno = 288 (0x120), region = 66  ;;  %342 = vmatprep.mubr.bf16.mxu0 (!%p214_p8), %v605_v5  ;;  %548 = vset.pattern.permute.xlu0 (!%p214_p8), %v605_v5  ;;  %v268_v15 = vld [vmem:[%s697_s0] sm:$0xf] (!%p214_p8)  ;;  %p254_p9 = scmp.lt.s32.totalorder (!%p214_p8), %s488_s8, 3 }
  0x1a   : > { %s506_s29 = smul.u32 (!%p214_p8), 40, %s220_s28  ;;  %363 = vperm.xlu0 (!%p214_p8), %548, %v360_v6  }
  0x1c   : > { %s222_s5 = scalar_lea.vmem (!%p214_p8), [#allocation3], %s506_s29 }
  0x1d   : > { %v549_v7 = vld [vmem:[%s222_s5 + $0x4] ss:$8 sps:$4 sm:$0xff] (!%p214_p8)   ;;  %v551_v8 = vld [vmem:[%s222_s5] ss:$8 sps:$4 sm:$0xff] (!%p214_p8)   ;;  %v552_v9 = vld [vmem:[%s222_s5 + $0x14] ss:$8 sps:$4 sm:$0xff] (!%p214_p8)  }
  0x1e   : > { %310 = vmatprep.subr.bf16.mxu0 (!%p214_p8), %v549_v7  ;;  %v273_v10 = vld [vmem:[%s222_s5 + $0x20] sm:$0x33] (!%p214_p8)  ;;  %v554_v11 = vld [vmem:[%s222_s5 + $0x10] ss:$8 sps:$4 sm:$0xff] (!%p214_p8)  }
  0x1f   : > { %311 = vmatpush1.bf16.msra.mxu0 (!%p214_p8), %v551_v8  ;;  %v495_v12 = vcombine.high (!%p214_p8), %v273_v10, %v273_v10  ;;  %v494_v13 = vcombine.low (!%p214_p8), %v273_v10, %v273_v10 }
  0x20   : > { %312 = vmatprep.subr.bf16.mxu0 %v552_v9  ;;  %s708_s8 = smov (!%p254_p9, %s488_s8), 3 }
  0x21   : > { %v305_v14 = vsel %vm303_vm0, %v494_v13, 0  ;;  %s489_s9 = sshll.u32 %s708_s8, 2 }
  0x22   : > { %s257_s12 = scalar_lea.vmem %s700_s3, %s489_s9 }
  0x23   : > { %313 = vmatpush1.bf16.msra.mxu0 %v554_v11 }
  0x24   : > { %496 = vmatprep.subr.msk.bf16.mxu0 %vm303_vm0, %v495_v12 }
  0x27   : > { %315 = vmatpush1.bf16.msra.mxu0 %v305_v14 }
  0x2a   : > { %497 = vmatmul.mubr.msk.bf16.vlgmr.msra.gmra.mrb[0].mxu0 %vm299_vm1, %v268_v15 }
  0x99   : > { %v364_v16 = vpop.permute.xlu0 %363 }
  0xfd   : > { %v344_v17 = vpop.f32.mrb[0].mxu0 }
  0xfe   : > { %v366_v18 = vadd.f32 %v364_v16, %v344_v17  ;;  %v346_v19 = vpop.f32.mrb[1].mxu0 }
  0xff   : > { %v367_v20 = vadd.f32 %v364_v16, %v346_v19  ;;  %v348_v21 = vpop.f32.mrb[2].mxu0 }
 0x100   : > { %v498_v22 = vmul.f32 -1.442695, %v366_v18  ;;  %v349_v23 = vpop.f32.mrb[3].mxu0 }
 0x101   : > { %v499_v24 = vmul.f32 -1.442695, %v367_v20 }
 0x102   : > { %557 = vpow2.f32 %v498_v22 }
 0x103   : > { %559 = vpow2.f32 %v499_v24 }
 0x10c   : > { %v558_v25 = vpop.eup %557 }
 0x10d   : > { %v560_v26 = vpop.eup %559  ;;  %v374_v27 = vadd.f32 1.0, %v558_v25 }
 0x10e   : > { %v375_v28 = vadd.f32 1.0, %v560_v26 }
 0x10f   : > { %561 = vrcp.f32 %v374_v27 }
 0x110   : > { %563 = vrcp.f32 %v375_v28 }
 0x119   : > { %v562_v29 = vpop.eup %561 }
 0x11a   : > { %v564_v30 = vpop.eup %563  ;;  %v380_v31 = vmul.f32 %v562_v29, %v366_v18 }
 0x11b   : > { %v381_v32 = vmul.f32 %v564_v30, %v367_v20 }
 0x11d   : > { %v504_v33 = vpack.c.bf16 %v381_v32, %v380_v31 }
 0x11f   : > { %390 = vst [vmem:[%s257_s12] sm:$0xff] %v504_v33 }
 0x120 PF: > { %s13_s16 = sadd.s32 1, %s603_s16   ;;  %s701_s12 = smov %s591_s13 }
 0x121   : > { %p10_p10 = scmp.ge.s32.totalorder %s13_s16, 4   ;;  %s702_s13 = smov %s661_s20 }
 0x122   : > { %s703_s14 = smov %s599_s15  ;;  %s704_s15 = smov %s706_s17 }
 0x123   :  { %12 = sbr.rel (!%p10_p10) target bundleno = 3 (0x3), region = 116 }

// kernel: efficientnet_cam_forward.4
= control target key start
LH: loop header
LB: loop body
LE: loop exit
PB: predicated region body
PF: predicated region fallthrough
CT: control target
= control target key end

     0   :  { %s772_s12 = smov 0   ;;  %s774_s13 = smov 0   ;;  %s857_s0 = inlined_call_operand.vmem [shape: bf16[16,72], index: 0, kind: input, shape index: {}]   ;;  %s858_s1 = inlined_call_operand.vmem [shape: bf16[72,512], index: 1, kind: input, shape index: {}]   ;;  %s859_s2 = inlined_call_operand.vmem [shape: f32[16,1], index: 2, kind: input, shape index: {}]   ;;  %s860_s3 = inlined_call_operand.vmem [shape: bf16[16,512], index: 3, kind: output, shape index: {}]  }
   0x1   :  { %s776_s14 = smov 0   ;;  %s778_s15 = smov 0  }
   0x2   :  { %s780_s16 = smov 0  }
   0x3 LB: > { %s25_s17 = sadd.s32 1, %s745_s15  ;;  %s599_s18 = sadd.s32 4294967295, %s749_s16   ;;  %s749_s16 = sphi %s780_s16, %s13_s16   ;;  %s745_s15 = sphi %s778_s15, %s865_s15   ;;  %s741_s14 = sphi %s776_s14, %s864_s14   ;;  %s737_s13 = sphi %s774_s13, %s863_s13   ;;  %s733_s12 = sphi %s772_s12, %s862_s12  }
   0x4   : > { %p27_p0 = scmp.ge.s32.totalorder %s25_s17, 2  ;;  %p67_p1 = scmp.ne.s32.totalorder %s737_s13, %s733_s12 }
   0x5   : > { %p68_p2 = scmp.eq.s32.totalorder %s749_s16, 0  ;;  %p118_p4 = scmp.eq.s32.totalorder %s599_s18, 1 }
   0x6   : > { %s867_s17 = smov (%p27_p0, %s25_s17), 0  ;;  %s60_s20 = sadd.s32 1, %s737_s13 }
   0x7   : > { %p69_p3 = por %p68_p2, %p67_p1  ;;  %s56_s19 = ssub.s32 %s745_s15, %s867_s17 }
   0x8   : > { %p58_p5 = scmp.eq.s32.totalorder %s56_s19, 0  ;;  %p807_p6 = por %p118_p4, %p67_p1 }
   0x9   : > { %p603_p7 = scmp.ge.s32.totalorder %s749_s16, 2 }
   0xa   : > { %s812_s22 = scalar_select %p58_p5, %s737_s13, %s60_s20  }
   0xb   : > { %150 = sbr.rel (%p603_p7) target bundleno = 27 (0x1b), region = 24 }
  0x12   : > { %153 = sbr.rel (!%p69_p3) target bundleno = 27 (0x1b), region = 28  ;;  %s155_s23 = sand.u32 (%p69_p3), 1, %s737_s13  }
  0x13   : > { %s632_s24 = sshll.u32 (%p69_p3), %s745_s15, 3  ;;  %s636_s25 = smul.u32 (%p69_p3), 72, %s155_s23 }
  0x14   : > { %s163_s28 = scalar_lea.vmem (%p69_p3), %s858_s1, %s632_s24 }
  0x15   : > { %v207_v0 = vld [vmem:[%s163_s28] sm:$0xff] (%p69_p3)  ;;  %v209_v1 = vld [vmem:[%s163_s28 + $0x10] sm:$0xff] (%p69_p3)  ;;  %s157_s29 = scalar_lea.vmem (%p69_p3), [#allocation3], %s636_s25 }
  0x16   : > { %v211_v2 = vld [vmem:[%s163_s28 + $0x20] sm:$0xff] (%p69_p3)  ;;  %v213_v3 = vld [vmem:[%s163_s28 + $0x30] sm:$0xff] (%p69_p3)  ;;  %208 = vst [vmem:[%s157_s29] sm:$0xff] (%p69_p3), %v207_v0  ;;  %210 = vst [vmem:[%s157_s29 + $0x8] sm:$0xff] (%p69_p3), %v209_v1 }
  0x17   : > { %v215_v4 = vld [vmem:[%s163_s28 + $0x40] sm:$0xff] (%p69_p3)  ;;  %v217_v5 = vld [vmem:[%s163_s28 + $0x50] sm:$0xff] (%p69_p3)  ;;  %212 = vst [vmem:[%s157_s29 + $0x10] sm:$0xff] (%p69_p3), %v211_v2  ;;  %214 = vst [vmem:[%s157_s29 + $0x18] sm:$0xff] (%p69_p3), %v213_v3 }
  0x18   : > { %216 = vst [vmem:[%s157_s29 + $0x20] sm:$0xff] (%p69_p3), %v215_v4  ;;  %218 = vst [vmem:[%s157_s29 + $0x28] sm:$0xff] (%p69_p3), %v217_v5  ;;  %v219_v6 = vld [vmem:[%s163_s28 + $0x60] sm:$0xff] (%p69_p3)  ;;  %v221_v7 = vld [vmem:[%s163_s28 + $0x70] sm:$0xff] (%p69_p3) }
  0x19   : > { %v223_v8 = vld [vmem:[%s163_s28 + $0x80] sm:$0xff]  ;;  %220 = vst [vmem:[%s157_s29 + $0x30] sm:$0xff] %v219_v6  ;;  %222 = vst [vmem:[%s157_s29 + $0x38] sm:$0xff] %v221_v7 }
  0x1a   : > { %224 = vst [vmem:[%s157_s29 + $0x40] sm:$0xff] %v223_v8 }
  0x1b PF: > { %p606_p8 = scmp.ge.s32.totalorder %s749_s16, 1  ;;  %p229_p9 = scmp.lt.s32.totalorder %s749_s16, 3 }
  0x1d   : > { %p230_p10 = pnand %p606_p8, %p229_p9 }
  0x1e   : > { %s236_s30 = sand.u32 (!%p230_p10), 1, %s733_s12   ;;  %v751_v9 = vmov (!%p230_p10), 0   ;;  %v412_v10 = vld [vmem:[%s859_s2] sm:$0xff] (!%p230_p10)  ;;  %v413_v11 = vld [vmem:[%s859_s2 + $0x8] sm:$0xff] (!%p230_p10)  ;;  %vm347_vm0 = vcmask (!%p230_p10), 1043456   ;;  %vm343_vm1 = vcmask (!%p230_p10), 588800  }
  0x1f   : > { %233 = sbr.rel (%p230_p10) target bundleno = 312 (0x138), region = 66  ;;  %386 = vmatprep.mubr.bf16.mxu0 (!%p230_p10), %v751_v9  ;;  %679 = vset.pattern.permute.xlu0 (!%p230_p10), %v751_v9  ;;  %v694_v24 = vld [vmem:[%s857_s0] sm:$0xff] (!%p230_p10)   ;;  %s607_s18 = sshll.u32 (!%p230_p10), %s236_s30, 4 }
  0x20   : > { %s637_s4 = smul.u32 (!%p230_p10), 72, %s236_s30  ;;  %416 = vperm.xlu0 (!%p230_p10), %679, %v412_v10   ;;  %s261_s19 = scalar_lea.vmem (!%p230_p10), [#allocation4], %s607_s18 }
  0x22   : > { %s238_s9 = scalar_lea.vmem (!%p230_p10), [#allocation3], %s637_s4 }
  0x23   : > { %v680_v12 = vld [vmem:[%s238_s9 + $0x4] ss:$8 sps:$4 sm:$0xff] (!%p230_p10)   ;;  %v682_v13 = vld [vmem:[%s238_s9] ss:$8 sps:$4 sm:$0xff] (!%p230_p10)   ;;  %v683_v14 = vld [vmem:[%s238_s9 + $0x14] ss:$8 sps:$4 sm:$0xff] (!%p230_p10)  }
  0x24   : > { %354 = vmatprep.subr.bf16.mxu0 (!%p230_p10), %v680_v12  ;;  %421 = vperm.xlu0 (!%p230_p10), %679, %v413_v11   ;;  %v685_v15 = vld [vmem:[%s238_s9 + $0x10] ss:$8 sps:$4 sm:$0xff] (!%p230_p10)   ;;  %v686_v16 = vld [vmem:[%s238_s9 + $0x24] ss:$8 sps:$4 sm:$0xff] (!%p230_p10)   ;;  %v688_v17 = vld [vmem:[%s238_s9 + $0x20] ss:$8 sps:$4 sm:$0xff] (!%p230_p10)  }
  0x25   : > { %355 = vmatpush1.bf16.msra.mxu0 (!%p230_p10), %v682_v13  ;;  %v689_v18 = vld [vmem:[%s238_s9 + $0x34] ss:$8 sps:$4 sm:$0xff] (!%p230_p10)   ;;  %v292_v19 = vld [vmem:[%s238_s9 + $0x40] sm:$0xff] (!%p230_p10)  ;;  %v691_v20 = vld [vmem:[%s238_s9 + $0x30] ss:$8 sps:$4 sm:$0xff] (!%p230_p10)  }
  0x26   : > { %356 = vmatprep.subr.bf16.mxu0 %v683_v14  ;;  %v618_v21 = vcombine.high %v292_v19, %v292_v19  ;;  %v617_v22 = vcombine.low %v292_v19, %v292_v19  ;;  %s635_s20 = sshll.u32 (%p807_p6), %s741_s14, 3 }
  0x27   : > { %s479_s24 = scalar_lea.vmem (%p807_p6), %s860_s3, %s635_s20 }
  0x28   : > { %v349_v23 = vsel %vm347_vm0, %v617_v22, 0 }
  0x29   : > { %357 = vmatpush1.bf16.msra.mxu0 %v685_v15 }
  0x2a   : > { %358 = vmatprep.subr.bf16.mxu0 %v686_v16 }
  0x2d   : > { %359 = vmatpush1.bf16.msra.mxu0 %v688_v17 }
  0x2e   : > { %360 = vmatprep.subr.bf16.mxu0 %v689_v18 }
  0x31   : > { %361 = vmatpush1.bf16.msra.mxu0 %v691_v20 }
  0x32   : > { %619 = vmatprep.subr.msk.bf16.mxu0 %vm347_vm0, %v618_v21 }
  0x35   : > { %363 = vmatpush1.bf16.msra.mxu0 %v349_v23 }
  0x38   : > { %620 = vmatmul.mubr.msk.bf16.vlgmr.msra.gmra.mrb[0].mxu0 %vm343_vm1, %v694_v24 }
  0x9f   : > { %v417_v25 = vpop.permute.xlu0 %416 }
  0xa3   : > { %v422_v29 = vpop.permute.xlu0 %421 }
 0x10b   : > { %v388_v26 = vpop.f32.mrb[0].mxu0 }
 0x10c   : > { %v424_v27 = vadd.f32 %v417_v25, %v388_v26  ;;  %v390_v28 = vpop.f32.mrb[1].mxu0 }
 0x10d   : > { %v425_v30 = vadd.f32 %v417_v25, %v390_v28  ;;  %v392_v31 = vpop.f32.mrb[2].mxu0 }
 0x10e   : > { %v621_v32 = vmul.f32 -1.442695, %v424_v27  ;;  %v426_v33 = vadd.f32 %v422_v29, %v392_v31  ;;  %v394_v34 = vpop.f32.mrb[3].mxu0 }
 0x10f   : > { %v622_v35 = vmul.f32 -1.442695, %v425_v30  ;;  %v427_v36 = vadd.f32 %v422_v29, %v394_v34 }
 0x110   : > { %695 = vpow2.f32 %v621_v32  ;;  %v623_v37 = vmul.f32 -1.442695, %v426_v33 }
 0x111   : > { %697 = vpow2.f32 %v622_v35  ;;  %v624_v38 = vmul.f32 -1.442695, %v427_v36 }
 0x112   : > { %699 = vpow2.f32 %v623_v37 }
 0x113   : > { %701 = vpow2.f32 %v624_v38 }
 0x11a   : > { %v696_v39 = vpop.eup %695 }
 0x11b   : > { %v698_v40 = vpop.eup %697  ;;  %v440_v41 = vadd.f32 1.0, %v696_v39 }
 0x11c   : > { %v700_v42 = vpop.eup %699  ;;  %v441_v43 = vadd.f32 1.0, %v698_v40 }
 0x11d   : > { %v702_v44 = vpop.eup %701  ;;  %703 = vrcp.f32 %v440_v41  ;;  %v442_v45 = vadd.f32 1.0, %v700_v42 }
 0x11e   : > { %705 = vrcp.f32 %v441_v43  ;;  %v443_v46 = vadd.f32 1.0, %v702_v44 }
 0x11f   : > { %707 = vrcp.f32 %v442_v45 }
 0x120   : > { %709 = vrcp.f32 %v443_v46 }
 0x127   : > { %v704_v47 = vpop.eup %703 }
 0x128   : > { %v706_v48 = vpop.eup %705  ;;  %v452_v49 = vmul.f32 %v704_v47, %v424_v27 }
 0x129   : > { %v708_v50 = vpop.eup %707  ;;  %v453_v51 = vmul.f32 %v706_v48, %v425_v30  ;;  %476 = sbr.rel (!%p807_p6) target bundleno = 312 (0x138), region = 82 }
 0x12a   : > { %v710_v52 = vpop.eup %709  ;;  %v454_v53 = vmul.f32 %v708_v50, %v426_v33 }
 0x12b   : > { %v633_v54 = vpack.c.bf16 %v453_v51, %v452_v49  ;;  %v455_v55 = vmul.f32 %v710_v52, %v427_v36 }
 0x12d   : > { %468 = vst [vmem:[%s261_s19] sm:$0xff] %v633_v54  ;;  %v634_v56 = vpack.c.bf16 %v455_v55, %v454_v53 }
 0x12f   : > { %469 = vst [vmem:[%s261_s19 + $0x8] sm:$0xff] %v634_v56 }
 0x134   : > { %v509_v57 = vld [vmem:[%s261_s19] sm:$0xff] }
 0x135   : > { %510 = vst [vmem:[%s479_s24] sm:$0xff] %v509_v57 }
 0x136   : > { %v511_v58 = vld [vmem:[%s261_s19 + $0x8] sm:$0xff] }
 0x137   : > { %512 = vst [vmem:[%s479_s24 + $0x10] sm:$0xff] %v511_v58 }
 0x138 PF: > { %s13_s16 = sadd.s32 1, %s749_s16   ;;  %s862_s12 = smov %s737_s13 }
 0x139   : > { %p10_p11 = scmp.ge.s32.totalorder %s13_s16, 4   ;;  %s863_s13 = smov %s812_s22 }
 0x13a   : > { %s864_s14 = smov %s745_s15  ;;  %s865_s15 = smov %s867_s17 }
 0x13b   :  { %12 = sbr.rel (!%p10_p11) target bundleno = 3 (0x3), region = 154 }

// kernel: efficientnet_cam_forward.5
= control target key start
LH: loop header
LB: loop body
LE: loop exit
PB: predicated region body
PF: predicated region fallthrough
CT: control target
= control target key end

     0   :  { %8 = vsyncpa [#allocation4], 0  ;;  %s2349_s12 = smov 0   ;;  %s2351_s13 = smov 0   ;;  %s2578_s0 = inlined_call_operand.vmem [shape: bf16[2,4096], index: 0, kind: input, shape index: {}]   ;;  %s2579_s1 = inlined_call_operand.vmem [shape: bf16[4096,10], index: 1, kind: input, shape index: {}]   ;;  %s2580_s2 = inlined_call_operand.vmem [shape: f32[1,10], index: 2, kind: input, shape index: {}]   ;;  %s2581_s3 = inlined_call_operand.hbm [shape: f32[2,10], index: 3, kind: output, shape index: {}]  }
   0x1   :  { %s2353_s14 = smov 0  }
   0x2 LB: > { %s1790_s15 = sadd.s32 4294967295, %s2324_s14   ;;  %s23_s16 = sadd.s32 1, %s2320_s13  ;;  %s2324_s14 = sphi %s2353_s14, %s14_s14   ;;  %s2320_s13 = sphi %s2351_s13, %s2584_s13   ;;  %s2316_s12 = sphi %s2349_s12, %s2583_s12  }
   0x3   : > { %p24_p0 = scmp.ge.s32.totalorder %s23_s16, 2  ;;  %p1794_p1 = scmp.ge.s32.totalorder %s2324_s14, 1 }
   0x4   : > { %p174_p2 = scmp.lt.s32.totalorder %s2324_s14, 3 }
   0x5   : > { %s2586_s16 = smov (%p24_p0, %s23_s16), 0 }
   0x6   : > { %p175_p3 = pnand %p1794_p1, %p174_p2 }
   0x7   : > { %s1795_s17 = sshll.u32 (!%p175_p3), %s2316_s12, 4  ;;  %s1796_s18 = sshll.u32 (!%p175_p3), %s2316_s12, 8 }
   0x8   : > { %178 = sbr.rel (%p175_p3) target bundleno = 411 (0x19b), region = 32  ;;  %p204_p4 = scmp.lt.s32.totalorder (!%p175_p3), %s1795_s17, 31 }
   0x9   : > { %p209_p5 = scmp.lt.s32.totalorder (!%p175_p3), %s1796_s18, 511  ;;  %p1798_p6 = scmp.ne.s32.totalorder (!%p175_p3), %s2316_s12, 0 }
   0xf   : > { %s2588_s17 = smov (!%p204_p4, %s1795_s17), 31  ;;  %s2590_s18 = smov (!%p209_p5, %s1796_s18), 511 }
  0x10   : > { %s2375_s21 = scalar_lea.vmem %s2578_s0, %s2588_s17  ;;  %s1797_s22 = sshll.u32 %s2590_s18, 2  ;;  %vm225_vm0 = vcmask (!%p1798_p6), 74752   ;;  %v2326_v0 = vmov (!%p1798_p6), 0.0  }
  0x11   : > { %s2380_s25 = scalar_lea.vmem %s2579_s1, %s1797_s22  ;;  %224 = sbr.rel (%p1798_p6) target bundleno = 24 (0x18), region = 36  ;;  %226 = vst.msk [vmem:[#allocation2] sm:$0x3] (!%p1798_p6), %vm225_vm0, %v2326_v0 }
  0x18 PF: > { %v2142_v1 = vld [vmem:[%s2380_s25 + $0x40] sm:$0xff]   ;;  %v2146_v5 = vld [vmem:[%s2380_s25 + $0x48] sm:$0xff]   ;;  %v2150_v9 = vld [vmem:[%s2380_s25 + $0x50] sm:$0xff]   ;;  %v492_v29 = vlaneseq  ;;  %v2327_v37 = vmov 1966171168   ;;  %vm1691_vm1 = vcmask 74752  }
  0x19   : > { %v2143_v2 = vld [vmem:[%s2380_s25 + $0xc0] sm:$0xff]   ;;  %1933 = vmatprep.subr.bf16.mxu0 %v2142_v1  ;;  %v2147_v6 = vld [vmem:[%s2380_s25 + $0xc8] sm:$0xff]   ;;  %v2151_v10 = vld [vmem:[%s2380_s25 + $0xd0] sm:$0xff]   ;;  %v490_v38 = vunpack.c.l.s4 %v2327_v37  ;;  %p1927_p7 = scmp.ne.s32.totalorder %s2316_s12, 1 }
  0x1a   : > { %v2144_v3 = vld [vmem:[%s2380_s25] sm:$0xff]   ;;  %1955 = vmatprep.subr.bf16.mxu1 %v2143_v2  ;;  %v2148_v7 = vld [vmem:[%s2380_s25 + $0x8] sm:$0xff]   ;;  %v2152_v11 = vld [vmem:[%s2380_s25 + $0x10] sm:$0xff]   ;;  %v493_v34 = vshrl.u32 %v492_v29, 7 }
  0x1b   : > { %v2145_v4 = vld [vmem:[%s2380_s25 + $0x80] sm:$0xff]   ;;  %1934 = vmatpush3.bf16.msra.mxu0 %v2144_v3  ;;  %v2149_v8 = vld [vmem:[%s2380_s25 + $0x88] sm:$0xff]   ;;  %v2153_v12 = vld [vmem:[%s2380_s25 + $0x90] sm:$0xff]   ;;  %v491_v41 = vunpack.c.0.s8 %v490_v38 }
  0x1c   : > { %1956 = vmatpush3.bf16.msra.mxu1 %v2145_v4  ;;  %1935 = vmatprep.subr.bf16.mxu0 %v2146_v5  ;;  %v2154_v13 = vld [vmem:[%s2380_s25 + $0x58] sm:$0xff]   ;;  %v2158_v17 = vld [vmem:[%s2380_s25 + $0x60] sm:$0xff]   ;;  %v2162_v21 = vld [vmem:[%s2380_s25 + $0x68] sm:$0xff]  }
  0x1d   : > { %1957 = vmatprep.subr.bf16.mxu1 %v2147_v6  ;;  %v2155_v14 = vld [vmem:[%s2380_s25 + $0xd8] sm:$0xff]   ;;  %v2159_v18 = vld [vmem:[%s2380_s25 + $0xe0] sm:$0xff]   ;;  %v2163_v22 = vld [vmem:[%s2380_s25 + $0xe8] sm:$0xff]   ;;  %v2418_v42 = vsub.s32 %v491_v41, %v493_v34 }
  0x1e   : > { %v2156_v15 = vld [vmem:[%s2380_s25 + $0x18] sm:$0xff]   ;;  %v2160_v19 = vld [vmem:[%s2380_s25 + $0x20] sm:$0xff]   ;;  %v2164_v23 = vld [vmem:[%s2380_s25 + $0x28] sm:$0xff]  }
  0x1f   : > { %1936 = vmatpush3.bf16.msra.mxu0 %v2148_v7  ;;  %v2157_v16 = vld [vmem:[%s2380_s25 + $0x98] sm:$0xff]   ;;  %v2161_v20 = vld [vmem:[%s2380_s25 + $0xa0] sm:$0xff]   ;;  %v2165_v24 = vld [vmem:[%s2380_s25 + $0xa8] sm:$0xff]  }
  0x20   : > { %1958 = vmatpush3.bf16.msra.mxu1 %v2149_v8  ;;  %1937 = vmatprep.subr.bf16.mxu0 %v2150_v9  ;;  %v2166_v25 = vld [vmem:[%s2380_s25 + $0x70] sm:$0xff]   ;;  %v2170_v30 = vld [vmem:[%s2380_s25 + $0x78] sm:$0xff]   ;;  %v228_v35 = vld [vmem:[%s2375_s21] sm:$0xff] }
  0x21   : > { %1959 = vmatprep.subr.bf16.mxu1 %v2151_v10  ;;  %v2167_v26 = vld [vmem:[%s2380_s25 + $0xf0] sm:$0xff]   ;;  %v2171_v31 = vld [vmem:[%s2380_s25 + $0xf8] sm:$0xff]   ;;  %v2175_v36 = vld [vmem:[%s2380_s25 + $0x140] sm:$0xff]   ;;  %v488_v40 = vcombine.high %v228_v35, %v228_v35  ;;  %v495_v43 = vrot.slane %v228_v35, %v2418_v42 }
  0x22   : > { %v2168_v27 = vld [vmem:[%s2380_s25 + $0x30] sm:$0xff]   ;;  %v2172_v32 = vld [vmem:[%s2380_s25 + $0x38] sm:$0xff]   ;;  %v2176_v39 = vld [vmem:[%s2380_s25 + $0x1c0] sm:$0xff]  }
  0x23   : > { %1938 = vmatpush3.bf16.msra.mxu0 %v2152_v11  ;;  %v2169_v28 = vld [vmem:[%s2380_s25 + $0xb0] sm:$0xff]   ;;  %v2173_v33 = vld [vmem:[%s2380_s25 + $0xb8] sm:$0xff]   ;;  %v2422_v44 = vrot.slane %v488_v40, %v2418_v42  ;;  %v503_v45 = vcombine.high %v495_v43, %v495_v43  ;;  %v511_v46 = vrot.slane %v495_v43, %v2418_v42  ;;  %v2177_v49 = vld [vmem:[%s2380_s25 + $0x100] sm:$0xff]  }
  0x24   : > { %1960 = vmatpush3.bf16.msra.mxu1 %v2153_v12  ;;  %1939 = vmatprep.subr.bf16.mxu0 %v2154_v13  ;;  %v2179_v52 = vld [vmem:[%s2380_s25 + $0x148] sm:$0xff]   ;;  %v2178_v54 = vld [vmem:[%s2380_s25 + $0x180] sm:$0xff]   ;;  %v2183_v58 = vld [vmem:[%s2380_s25 + $0x150] sm:$0xff]  }
  0x25   : > { %1961 = vmatprep.subr.bf16.mxu1 %v2155_v14  ;;  %v504_v47 = vcombine.high %v2422_v44, %v2422_v44  ;;  %v525_v48 = vrot.slane %v503_v45, %v2418_v42  ;;  %v533_v51 = vcombine.high %v511_v46, %v511_v46  ;;  %v2180_v55 = vld [vmem:[%s2380_s25 + $0x1c8] sm:$0xff]   ;;  %v2184_v60 = vld [vmem:[%s2380_s25 + $0x1d0] sm:$0xff]   ;;  %v2187_v62 = vld [vmem:[%s2380_s25 + $0x158] sm:$0xff]  }
  0x26   : > { %v2181_v57 = vld [vmem:[%s2380_s25 + $0x108] sm:$0xff]   ;;  %v2185_v61 = vld [vmem:[%s2380_s25 + $0x110] sm:$0xff]   ;;  %v2188_v0 = vld [vmem:[%s2380_s25 + $0x1d8] sm:$0xff]  }
  0x27   : > { %1940 = vmatpush3.bf16.msra.mxu0 %v2156_v15  ;;  %v532_v50 = vrot.slane %v504_v47, %v2418_v42  ;;  %1402 = vmatprep.mubr.bf16.mxu0 %v525_v48  ;;  %v535_v53 = vcombine.high %v525_v48, %v525_v48  ;;  %v2182_v59 = vld [vmem:[%s2380_s25 + $0x188] sm:$0xff]   ;;  %v2186_v63 = vld [vmem:[%s2380_s25 + $0x190] sm:$0xff]   ;;  %v2189_v1 = vld [vmem:[%s2380_s25 + $0x118] sm:$0xff]  }
  0x28   : > { %1962 = vmatpush3.bf16.msra.mxu1 %v2157_v16  ;;  %1941 = vmatprep.subr.bf16.mxu0 %v2158_v17  ;;  %v2191_v2 = vld [vmem:[%s2380_s25 + $0x160] sm:$0xff]   ;;  %v2190_v3 = vld [vmem:[%s2380_s25 + $0x198] sm:$0xff]   ;;  %v2195_v6 = vld [vmem:[%s2380_s25 + $0x168] sm:$0xff]  }
  0x29   : > { %1963 = vmatprep.subr.bf16.mxu1 %v2159_v18  ;;  %v536_v56 = vcombine.high %v532_v50, %v532_v50  ;;  %1442 = vmatprep.mubr.bf16.mxu1 %v535_v53  ;;  %v2192_v4 = vld [vmem:[%s2380_s25 + $0x1e0] sm:$0xff]   ;;  %v2196_v8 = vld [vmem:[%s2380_s25 + $0x1e8] sm:$0xff]   ;;  %v2199_v10 = vld [vmem:[%s2380_s25 + $0x170] sm:$0xff]   ;;  %v518_v18 = vrot.slane %v2422_v44, %v2418_v42 }
  0x2a   : > { %v2193_v5 = vld [vmem:[%s2380_s25 + $0x120] sm:$0xff]   ;;  %v2197_v9 = vld [vmem:[%s2380_s25 + $0x128] sm:$0xff]   ;;  %v2200_v12 = vld [vmem:[%s2380_s25 + $0x1f0] sm:$0xff]  }
  0x2b   : > { %1942 = vmatpush3.bf16.msra.mxu0 %v2160_v19  ;;  %v2194_v7 = vld [vmem:[%s2380_s25 + $0x1a0] sm:$0xff]   ;;  %v2198_v11 = vld [vmem:[%s2380_s25 + $0x1a8] sm:$0xff]   ;;  %v2201_v13 = vld [vmem:[%s2380_s25 + $0x130] sm:$0xff]  }
  0x2c   : > { %1964 = vmatpush3.bf16.msra.mxu1 %v2161_v20  ;;  %1943 = vmatprep.subr.bf16.mxu0 %v2162_v21  ;;  %v2203_v14 = vld [vmem:[%s2380_s25 + $0x178] sm:$0xff]   ;;  %v2202_v15 = vld [vmem:[%s2380_s25 + $0x1b0] sm:$0xff]   ;;  %v2207_v19 = vld [vmem:[%s2380_s25 + $0x240] sm:$0xff]  }
  0x2d   : > { %1965 = vmatprep.subr.bf16.mxu1 %v2163_v22  ;;  %v2204_v16 = vld [vmem:[%s2380_s25 + $0x1f8] sm:$0xff]   ;;  %v2208_v21 = vld [vmem:[%s2380_s25 + $0x2c0] sm:$0xff]   ;;  %v2214_v29 = vld [vmem:[%s2380_s25 + $0x288] sm:$0xff]  }
  0x2e   : > { %v2205_v17 = vld [vmem:[%s2380_s25 + $0x138] sm:$0xff]   ;;  %v2209_v22 = vld [vmem:[%s2380_s25 + $0x200] sm:$0xff]   ;;  %v2227_v40 = vld [vmem:[%s2380_s25 + $0x268] sm:$0xff]  }
  0x2f   : > { %1944 = vmatpush3.bf16.msra.mxu0 %v2164_v23  ;;  %v2206_v20 = vld [vmem:[%s2380_s25 + $0x1b8] sm:$0xff]   ;;  %v534_v23 = vcombine.high %v518_v18, %v518_v18  ;;  %v2224_v38 = vld [vmem:[%s2380_s25 + $0x2e0] sm:$0xff]   ;;  %v2228_v43 = vld [vmem:[%s2380_s25 + $0x2e8] sm:$0xff]  }
  0x30   : > { %1966 = vmatpush3.bf16.msra.mxu1 %v2165_v24  ;;  %1945 = vmatprep.subr.bf16.mxu0 %v2166_v25  ;;  %v2211_v24 = vld [vmem:[%s2380_s25 + $0x248] sm:$0xff]   ;;  %v2210_v25 = vld [vmem:[%s2380_s25 + $0x280] sm:$0xff]   ;;  %v2220_v34 = vld [vmem:[%s2380_s25 + $0x2d8] sm:$0xff]  }
  0x31   : > { %1967 = vmatprep.subr.bf16.mxu1 %v2167_v26  ;;  %v2212_v26 = vld [vmem:[%s2380_s25 + $0x2c8] sm:$0xff]   ;;  %v2221_v35 = vld [vmem:[%s2380_s25 + $0x218] sm:$0xff]   ;;  %v2226_v41 = vld [vmem:[%s2380_s25 + $0x2a0] sm:$0xff]  }
  0x32   : > { %v2222_v37 = vld [vmem:[%s2380_s25 + $0x298] sm:$0xff]   ;;  %v2229_v44 = vld [vmem:[%s2380_s25 + $0x228] sm:$0xff]   ;;  %v2231_v45 = vld [vmem:[%s2380_s25 + $0x270] sm:$0xff]  }
  0x33   : > { %1946 = vmatpush3.bf16.msra.mxu0 %v2168_v27  ;;  %v2213_v27 = vld [vmem:[%s2380_s25 + $0x208] sm:$0xff]  }
  0x34   : > { %1968 = vmatpush3.bf16.msra.mxu1 %v2169_v28  ;;  %1947 = vmatprep.subr.bf16.mxu0 %v2170_v30  ;;  %v2215_v28 = vld [vmem:[%s2380_s25 + $0x250] sm:$0xff]   ;;  %v2230_v47 = vld [vmem:[%s2380_s25 + $0x2a8] sm:$0xff]  }
  0x35   : > { %1969 = vmatprep.subr.bf16.mxu1 %v2171_v31  ;;  %v2216_v30 = vld [vmem:[%s2380_s25 + $0x2d0] sm:$0xff]  }
  0x36   : > { %v2217_v31 = vld [vmem:[%s2380_s25 + $0x210] sm:$0xff]  }
  0x37   : > { %1948 = vmatpush3.bf16.msra.mxu0 %v2172_v32  ;;  %v2219_v32 = vld [vmem:[%s2380_s25 + $0x258] sm:$0xff]  }
  0x38   : > { %1970 = vmatpush3.bf16.msra.mxu1 %v2173_v33  ;;  %1977 = vmatprep.subr.bf16.mxu0 %v2175_v36  ;;  %v2218_v33 = vld [vmem:[%s2380_s25 + $0x290] sm:$0xff]   ;;  %v2223_v36 = vld [vmem:[%s2380_s25 + $0x260] sm:$0xff]  }
  0x39   : > { %1999 = vmatprep.subr.bf16.mxu1 %v2176_v39  ;;  %v2225_v39 = vld [vmem:[%s2380_s25 + $0x220] sm:$0xff]  }
  0x3a   : > { %1403 = vmatmul.mubr.bf16.vlgmr.msra.gmra.mrb[0].mxu0 %v511_v46  ;;  %v229_v46 = vld [vmem:[%s2375_s21 + $0x8] sm:$0xff] }
  0x3b   : > { %1978 = vmatpush3.bf16.msra.mxu0 %v2177_v49  ;;  %1443 = vmatmul.mubr.bf16.vlgmr.msra.gmra.mrb[0].mxu1 %v533_v51  ;;  %v544_v48 = vrot.slane %v229_v46, %v2418_v42  ;;  %v537_v49 = vcombine.high %v229_v46, %v229_v46  ;;  %v2233_v51 = vld [vmem:[%s2380_s25 + $0x230] sm:$0xff]  }
  0x3c   : > { %1979 = vmatprep.subr.bf16.mxu0 %v2179_v52  ;;  %2000 = vmatpush3.bf16.msra.mxu1 %v2178_v54  ;;  %v2235_v54 = vld [vmem:[%s2380_s25 + $0x278] sm:$0xff]  }
  0x3d   : > { %1482 = vmatprep.mubr.bf16.mxu0 %v532_v50  ;;  %2001 = vmatprep.subr.bf16.mxu1 %v2180_v55  ;;  %v2232_v50 = vld [vmem:[%s2380_s25 + $0x2f0] sm:$0xff]   ;;  %v552_v52 = vcombine.high %v544_v48, %v544_v48  ;;  %v2491_v53 = vrot.slane %v537_v49, %v2418_v42 }
  0x3e   : > { %1522 = vmatprep.mubr.bf16.mxu1 %v536_v56  ;;  %v2234_v55 = vld [vmem:[%s2380_s25 + $0x2b0] sm:$0xff]  }
  0x3f   : > { %1980 = vmatpush3.bf16.msra.mxu0 %v2181_v57  ;;  %v574_v56 = vrot.slane %v552_v52, %v2418_v42  ;;  %v553_v57 = vcombine.high %v2491_v53, %v2491_v53 }
  0x40   : > { %1981 = vmatprep.subr.bf16.mxu0 %v2183_v58  ;;  %2002 = vmatpush3.bf16.msra.mxu1 %v2182_v59  ;;  %v2236_v58 = vld [vmem:[%s2380_s25 + $0x2f8] sm:$0xff]  }
  0x41   : > { %2003 = vmatprep.subr.bf16.mxu1 %v2184_v60  ;;  %v2237_v59 = vld [vmem:[%s2380_s25 + $0x238] sm:$0xff]   ;;  %v584_v60 = vcombine.high %v574_v56, %v574_v56 }
  0x43   : > { %1982 = vmatpush3.bf16.msra.mxu0 %v2185_v61  ;;  %v560_v61 = vrot.slane %v544_v48, %v2418_v42 }
  0x44   : > { %1983 = vmatprep.subr.bf16.mxu0 %v2187_v62  ;;  %2004 = vmatpush3.bf16.msra.mxu1 %v2186_v63  ;;  %v2239_v62 = vld [vmem:[%s2380_s25 + $0x340] sm:$0xff]   ;;  %v2238_v63 = vld [vmem:[%s2380_s25 + $0x2b8] sm:$0xff]  }
  0x45   : > { %2005 = vmatprep.subr.bf16.mxu1 %v2188_v0  ;;  %v581_v0 = vrot.slane %v553_v57, %v2418_v42 }
  0x47   : > { %1984 = vmatpush3.bf16.msra.mxu0 %v2189_v1  ;;  %v2240_v1 = vld [vmem:[%s2380_s25 + $0x3c0] sm:$0xff]  }
  0x48   : > { %1985 = vmatprep.subr.bf16.mxu0 %v2191_v2  ;;  %2006 = vmatpush3.bf16.msra.mxu1 %v2190_v3  ;;  %v2241_v2 = vld [vmem:[%s2380_s25 + $0x300] sm:$0xff]   ;;  %v582_v3 = vcombine.high %v560_v61, %v560_v61 }
  0x49   : > { %2007 = vmatprep.subr.bf16.mxu1 %v2192_v4  ;;  %v2243_v4 = vld [vmem:[%s2380_s25 + $0x348] sm:$0xff]  }
  0x4b   : > { %1986 = vmatpush3.bf16.msra.mxu0 %v2193_v5  ;;  %v2242_v5 = vld [vmem:[%s2380_s25 + $0x380] sm:$0xff]  }
  0x4c   : > { %1987 = vmatprep.subr.bf16.mxu0 %v2195_v6  ;;  %2008 = vmatpush3.bf16.msra.mxu1 %v2194_v7  ;;  %v585_v6 = vcombine.high %v581_v0, %v581_v0  ;;  %v2244_v7 = vld [vmem:[%s2380_s25 + $0x3c8] sm:$0xff]  }
  0x4d   : > { %2009 = vmatprep.subr.bf16.mxu1 %v2196_v8  ;;  %v2245_v8 = vld [vmem:[%s2380_s25 + $0x308] sm:$0xff]  }
  0x4f   : > { %1988 = vmatpush3.bf16.msra.mxu0 %v2197_v9  ;;  %v2247_v9 = vld [vmem:[%s2380_s25 + $0x350] sm:$0xff]  }
  0x50   : > { %1989 = vmatprep.subr.bf16.mxu0 %v2199_v10  ;;  %2010 = vmatpush3.bf16.msra.mxu1 %v2198_v11  ;;  %v2246_v10 = vld [vmem:[%s2380_s25 + $0x388] sm:$0xff]   ;;  %v2248_v11 = vld [vmem:[%s2380_s25 + $0x3d0] sm:$0xff]  }
  0x51   : > { %2011 = vmatprep.subr.bf16.mxu1 %v2200_v12  ;;  %v2249_v12 = vld [vmem:[%s2380_s25 + $0x310] sm:$0xff]  }
  0x53   : > { %1990 = vmatpush3.bf16.msra.mxu0 %v2201_v13  ;;  %v2251_v13 = vld [vmem:[%s2380_s25 + $0x358] sm:$0xff]  }
  0x54   : > { %1991 = vmatprep.subr.bf16.mxu0 %v2203_v14  ;;  %2012 = vmatpush3.bf16.msra.mxu1 %v2202_v15  ;;  %v2250_v14 = vld [vmem:[%s2380_s25 + $0x390] sm:$0xff]   ;;  %v2252_v15 = vld [vmem:[%s2380_s25 + $0x3d8] sm:$0xff]  }
  0x55   : > { %2013 = vmatprep.subr.bf16.mxu1 %v2204_v16  ;;  %v2253_v16 = vld [vmem:[%s2380_s25 + $0x318] sm:$0xff]  }
  0x57   : > { %1992 = vmatpush3.bf16.msra.mxu0 %v2205_v17  ;;  %v2255_v17 = vld [vmem:[%s2380_s25 + $0x360] sm:$0xff]  }
  0x58   : > { %2021 = vmatprep.subr.bf16.mxu0 %v2207_v19  ;;  %2014 = vmatpush3.bf16.msra.mxu1 %v2206_v20  ;;  %v2256_v19 = vld [vmem:[%s2380_s25 + $0x3e0] sm:$0xff]  }
  0x59   : > { %2043 = vmatprep.subr.bf16.mxu1 %v2208_v21  ;;  %v2257_v20 = vld [vmem:[%s2380_s25 + $0x320] sm:$0xff]   ;;  %v2259_v21 = vld [vmem:[%s2380_s25 + $0x368] sm:$0xff]  }
  0x5a   : > { %1483 = vmatmul.mubr.bf16.vlgmr.msra.gmra.mrb[4].mxu0 %v518_v18  ;;  %v2254_v18 = vld [vmem:[%s2380_s25 + $0x398] sm:$0xff]  }
  0x5b   : > { %2022 = vmatpush3.bf16.msra.mxu0 %v2209_v22  ;;  %1523 = vmatmul.mubr.bf16.vlgmr.msra.gmra.mrb[4].mxu1 %v534_v23  ;;  %v2258_v22 = vld [vmem:[%s2380_s25 + $0x3a0] sm:$0xff]   ;;  %v2260_v23 = vld [vmem:[%s2380_s25 + $0x3e8] sm:$0xff]  }
  0x5c   : > { %2023 = vmatprep.subr.bf16.mxu0 %v2211_v24  ;;  %2044 = vmatpush3.bf16.msra.mxu1 %v2210_v25  ;;  %v2261_v24 = vld [vmem:[%s2380_s25 + $0x328] sm:$0xff]   ;;  %v2263_v25 = vld [vmem:[%s2380_s25 + $0x370] sm:$0xff]  }
  0x5d   : > { %2045 = vmatprep.subr.bf16.mxu1 %v2212_v26  ;;  %1562 = vmatprep.mubr.bf16.mxu0 %v574_v56  ;;  %v2262_v26 = vld [vmem:[%s2380_s25 + $0x3a8] sm:$0xff]  }
  0x5e   : > { %1602 = vmatprep.mubr.bf16.mxu1 %v584_v60 }
  0x5f   : > { %2024 = vmatpush3.bf16.msra.mxu0 %v2213_v27  ;;  %v2264_v27 = vld [vmem:[%s2380_s25 + $0x3f0] sm:$0xff]  }
  0x60   : > { %2025 = vmatprep.subr.bf16.mxu0 %v2215_v28  ;;  %2046 = vmatpush3.bf16.msra.mxu1 %v2214_v29  ;;  %v2265_v28 = vld [vmem:[%s2380_s25 + $0x330] sm:$0xff]   ;;  %v2267_v29 = vld [vmem:[%s2380_s25 + $0x378] sm:$0xff]  }
  0x61   : > { %2047 = vmatprep.subr.bf16.mxu1 %v2216_v30  ;;  %v2266_v30 = vld [vmem:[%s2380_s25 + $0x3b0] sm:$0xff]  }
  0x63   : > { %2026 = vmatpush3.bf16.msra.mxu0 %v2217_v31  ;;  %v2268_v31 = vld [vmem:[%s2380_s25 + $0x3f8] sm:$0xff]  }
  0x64   : > { %2027 = vmatprep.subr.bf16.mxu0 %v2219_v32  ;;  %2048 = vmatpush3.bf16.msra.mxu1 %v2218_v33  ;;  %v2269_v32 = vld [vmem:[%s2380_s25 + $0x338] sm:$0xff]   ;;  %v567_v33 = vrot.slane %v2491_v53, %v2418_v42 }
  0x65   : > { %2049 = vmatprep.subr.bf16.mxu1 %v2220_v34  ;;  %v2270_v34 = vld [vmem:[%s2380_s25 + $0x3b8] sm:$0xff]  }
  0x67   : > { %2028 = vmatpush3.bf16.msra.mxu0 %v2221_v35  ;;  %v583_v35 = vcombine.high %v567_v33, %v567_v33 }
  0x68   : > { %2029 = vmatprep.subr.bf16.mxu0 %v2223_v36  ;;  %2050 = vmatpush3.bf16.msra.mxu1 %v2222_v37 }
  0x69   : > { %2051 = vmatprep.subr.bf16.mxu1 %v2224_v38 }
  0x6b   : > { %2030 = vmatpush3.bf16.msra.mxu0 %v2225_v39 }
  0x6c   : > { %2031 = vmatprep.subr.bf16.mxu0 %v2227_v40  ;;  %2052 = vmatpush3.bf16.msra.mxu1 %v2226_v41 }
  0x6d   : > { %2053 = vmatprep.subr.bf16.mxu1 %v2228_v43 }
  0x6f   : > { %2032 = vmatpush3.bf16.msra.mxu0 %v2229_v44 }
  0x70   : > { %2033 = vmatprep.subr.bf16.mxu0 %v2231_v45  ;;  %2054 = vmatpush3.bf16.msra.mxu1 %v2230_v47 }
  0x71   : > { %2055 = vmatprep.subr.bf16.mxu1 %v2232_v50 }
  0x73   : > { %2034 = vmatpush3.bf16.msra.mxu0 %v2233_v51 }
  0x74   : > { %2035 = vmatprep.subr.bf16.mxu0 %v2235_v54  ;;  %2056 = vmatpush3.bf16.msra.mxu1 %v2234_v55 }
  0x75   : > { %2057 = vmatprep.subr.bf16.mxu1 %v2236_v58 }
  0x77   : > { %2036 = vmatpush3.bf16.msra.mxu0 %v2237_v59 }
  0x78   : > { %2065 = vmatprep.subr.bf16.mxu0 %v2239_v62  ;;  %2058 = vmatpush3.bf16.msra.mxu1 %v2238_v63 }
  0x79   : > { %2087 = vmatprep.subr.bf16.mxu1 %v2240_v1 }
  0x7a   : > { %1563 = vmatmul.mubr.bf16.vlgmr.msra.gmra.mrb[8].mxu0 %v560_v61 }
  0x7b   : > { %2066 = vmatpush3.bf16.msra.mxu0 %v2241_v2  ;;  %1642 = vmatprep.mubr.bf16.mxu0 %v581_v0 }
  0x7c   : > { %1603 = vmatmul.mubr.bf16.vlgmr.msra.gmra.mrb[8].mxu1 %v582_v3  ;;  %2067 = vmatprep.subr.bf16.mxu0 %v2243_v4 }
  0x7d   : > { %2088 = vmatpush3.bf16.msra.mxu1 %v2242_v5  ;;  %1682 = vmatprep.mubr.bf16.mxu1 %v585_v6 }
  0x7e   : > { %2089 = vmatprep.subr.bf16.mxu1 %v2244_v7 }
  0x7f   : > { %2068 = vmatpush3.bf16.msra.mxu0 %v2245_v8 }
  0x80   : > { %2069 = vmatprep.subr.bf16.mxu0 %v2247_v9 }
  0x81   : > { %2090 = vmatpush3.bf16.msra.mxu1 %v2246_v10 }
  0x82   : > { %2091 = vmatprep.subr.bf16.mxu1 %v2248_v11 }
  0x83   : > { %2070 = vmatpush3.bf16.msra.mxu0 %v2249_v12 }
  0x84   : > { %2071 = vmatprep.subr.bf16.mxu0 %v2251_v13 }
  0x85   : > { %2092 = vmatpush3.bf16.msra.mxu1 %v2250_v14 }
  0x86   : > { %2093 = vmatprep.subr.bf16.mxu1 %v2252_v15 }
  0x87   : > { %2072 = vmatpush3.bf16.msra.mxu0 %v2253_v16 }
  0x88   : > { %2073 = vmatprep.subr.bf16.mxu0 %v2255_v17  ;;  %v227_v17 = vld [vmem:[#allocation2] sm:$0x3] }
  0x89   : > { %2094 = vmatpush3.bf16.msra.mxu1 %v2254_v18 }
  0x8a   : > { %2095 = vmatprep.subr.bf16.mxu1 %v2256_v19 }
  0x8b   : > { %2074 = vmatpush3.bf16.msra.mxu0 %v2257_v20 }
  0x8c   : > { %2075 = vmatprep.subr.bf16.mxu0 %v2259_v21 }
  0x8d   : > { %2096 = vmatpush3.bf16.msra.mxu1 %v2258_v22  ;;  %v1928_v22 = vld [vmem:[%s2580_s2] ss:$0 sm:$0xff] (!%p1927_p7) }
  0x8e   : > { %2097 = vmatprep.subr.bf16.mxu1 %v2260_v23 }
  0x8f   : > { %2076 = vmatpush3.bf16.msra.mxu0 %v2261_v24 }
  0x90   : > { %2077 = vmatprep.subr.bf16.mxu0 %v2263_v25 }
  0x91   : > { %2098 = vmatpush3.bf16.msra.mxu1 %v2262_v26 }
  0x92   : > { %2099 = vmatprep.subr.bf16.mxu1 %v2264_v27 }
  0x93   : > { %2078 = vmatpush3.bf16.msra.mxu0 %v2265_v28 }
  0x94   : > { %2079 = vmatprep.subr.bf16.mxu0 %v2267_v29 }
  0x95   : > { %2100 = vmatpush3.bf16.msra.mxu1 %v2266_v30 }
  0x96   : > { %2101 = vmatprep.subr.bf16.mxu1 %v2268_v31 }
  0x97   : > { %2080 = vmatpush3.bf16.msra.mxu0 %v2269_v32 }
  0x99   : > { %2102 = vmatpush3.bf16.msra.mxu1 %v2270_v34 }
  0x9a   : > { %1643 = vmatmul.mubr.bf16.vlgmr.msra.gmra.mrb[12].mxu0 %v567_v33 }
  0x9c   : > { %1683 = vmatmul.mubr.bf16.vlgmr.msra.gmra.mrb[12].mxu1 %v583_v35 }
 0x10d   : > { %v1949_v36 = vpop.f32.mrb[0].mxu0 }
 0x10e   : > { %v1950_v37 = vpop.f32.mrb[1].mxu0  ;;  %v1971_v38 = vpop.f32.mrb[0].mxu1 }
 0x10f   : > { %v1951_v39 = vadd.f32 %v1950_v37, %v1949_v36  ;;  %v1952_v40 = vpop.f32.mrb[2].mxu0  ;;  %v1972_v41 = vpop.f32.mrb[1].mxu1 }
 0x110   : > { %v1953_v43 = vpop.f32.mrb[3].mxu0  ;;  %v1973_v44 = vadd.f32 %v1972_v41, %v1971_v38  ;;  %v1974_v45 = vpop.f32.mrb[2].mxu1 }
 0x111   : > { %v1975_v46 = vpop.f32.mrb[3].mxu1 }
 0x112   : > { %v1445_v47 = vadd.f32 %v1973_v44, %v1951_v39 }
 0x12d   : > { %v1993_v42 = vpop.f32.mrb[4].mxu0 }
 0x12e   : > { %v1994_v48 = vpop.f32.mrb[5].mxu0  ;;  %v2015_v49 = vpop.f32.mrb[4].mxu1 }
 0x12f   : > { %v1995_v50 = vadd.f32 %v1994_v48, %v1993_v42  ;;  %v1996_v51 = vpop.f32.mrb[6].mxu0  ;;  %v2016_v52 = vpop.f32.mrb[5].mxu1 }
 0x130   : > { %v1997_v53 = vpop.f32.mrb[7].mxu0  ;;  %v2017_v55 = vadd.f32 %v2016_v52, %v2015_v49  ;;  %v2018_v56 = vpop.f32.mrb[6].mxu1 }
 0x131   : > { %v1485_v54 = vadd.f32 %v1995_v50, %v1445_v47  ;;  %v2019_v57 = vpop.f32.mrb[7].mxu1 }
 0x133   : > { %v1525_v58 = vadd.f32 %v2017_v55, %v1485_v54 }
 0x14d   : > { %v2037_v59 = vpop.f32.mrb[8].mxu0 }
 0x14e   : > { %v2038_v60 = vpop.f32.mrb[9].mxu0 }
 0x14f   : > { %v2059_v61 = vpop.f32.mrb[8].mxu1  ;;  %v2039_v62 = vadd.f32 %v2038_v60, %v2037_v59  ;;  %v2040_v63 = vpop.f32.mrb[10].mxu0 }
 0x150   : > { %v2060_v0 = vpop.f32.mrb[9].mxu1  ;;  %v2041_v1 = vpop.f32.mrb[11].mxu0 }
 0x151   : > { %v1565_v2 = vadd.f32 %v2039_v62, %v1525_v58  ;;  %v2061_v3 = vadd.f32 %v2060_v0, %v2059_v61  ;;  %v2062_v4 = vpop.f32.mrb[10].mxu1 }
 0x152   : > { %v2063_v5 = vpop.f32.mrb[11].mxu1 }
 0x153   : > { %v1605_v6 = vadd.f32 %v2061_v3, %v1565_v2 }
 0x16d   : > { %v2081_v7 = vpop.f32.mrb[12].mxu0 }
 0x16e   : > { %v2082_v8 = vpop.f32.mrb[13].mxu0 }
 0x16f   : > { %v2103_v9 = vpop.f32.mrb[12].mxu1  ;;  %v2083_v10 = vadd.f32 %v2082_v8, %v2081_v7  ;;  %v2084_v11 = vpop.f32.mrb[14].mxu0 }
 0x170   : > { %v2104_v12 = vpop.f32.mrb[13].mxu1  ;;  %v2085_v13 = vpop.f32.mrb[15].mxu0 }
 0x171   : > { %v1645_v14 = vadd.f32 %v2083_v10, %v1605_v6  ;;  %v2105_v15 = vadd.f32 %v2104_v12, %v2103_v9  ;;  %v2106_v16 = vpop.f32.mrb[14].mxu1  ;;  %1696 = sbr.rel (%p1927_p7) target bundleno = 386 (0x182), region = 40 }
 0x172   : > { %v2107_v18 = vpop.f32.mrb[15].mxu1 }
 0x173   : > { %v1685_v19 = vadd.f32 %v2105_v15, %v1645_v14 }
 0x175   : > { %v1690_v20 = vadd.f32 %v1685_v19, %v227_v17 }
 0x177   : > { %1692 = vst.msk [vmem:[#allocation2] sm:$0x3] %vm1691_vm1, %v1690_v20 }
 0x17e   : > { %v1697_v21 = vld [vmem:[#allocation2] sm:$0x3] }
 0x17f   : > { %v1705_v23 = vadd.f32 %v1928_v22, %v1697_v21 }
 0x181   : > { %1706 = vst.msk [vmem:[#allocation3] sm:$0x3] %vm1691_vm1, %v1705_v23 }
 0x182 PF: > { %p2543_p8 = scmp.eq.s32.totalorder %s1790_s15, 1  ;;  %s2328_s29 = smov [#allocation3]  }
 0x183   : > { %s1716_s30 = sshll.u32 %s2328_s29, 4  ;;  %s1717_s30 = int_to_ptr.vmem [resolvable:$true] %s1716_s30 }
 0x184   : > { %s2272_s4 = scalar_lea.vmem %s1717_s30, 32  ;;  %p2279_p12 = scmp.lt.s32.totalorder %s1717_s30, %s1717_s30 }
 0x185   : > { %p2273_p9 = scmp.ne.s32.totalorder %s1717_s30, %s2272_s4  ;;  %p2280_p13 = scmp.lt.s32.totalorder %s2272_s4, %s2272_s4 }
 0x187   : > { %p2274_p10 = pnand %p2273_p9, %p2543_p8  ;;  %p2281_p0 = por %p2280_p13, %p2279_p12 }
 0x189   : > { %p2275_p11 = pneg %p2274_p10 }
 0x18b   : > { %p2282_p1 = pnand %p2281_p0, %p2275_p11 }
 0x18d   : > { %2285 = shalt.err (!%p2282_p1)
}
 0x18e   : > { %s2286_s7 = scalar_lea.hbm %s2581_s3, 32 }
 0x18f   : > { %p2287_p2 = scmp.ne.s32.totalorder %s2581_s3, %s2286_s7  ;;  %p2292_p5 = scmp.lt.u32.totalorder %s2286_s7, %s2581_s3 }
 0x191   : > { %p2288_p3 = pnand %p2287_p2, %p2543_p8 }
 0x193   : > { %p2289_p4 = pneg %p2288_p3 }
 0x195   : > { %p2294_p6 = pnand %p2292_p5, %p2289_p4 }
 0x197   : > { %2297 = shalt.err (!%p2294_p6)
}
 0x198   : > { %2110 = dma.vmem_to_hbm [thread:$0]  (%p2543_p8), %s1717_s30, 32, %s2581_s3, [#allocation4]  }
 0x199   : > { %2311 = dma.done.wait (%p2543_p8), [#allocation4], 32  }
 0x19a   : > { %2313 = vsyncadd (%p2543_p8), [#allocation4], 4294967264 }
 0x19b PF: > { %s14_s14 = sadd.s32 1, %s2324_s14   ;;  %s2583_s12 = smov %s2320_s13 }
 0x19c   : > { %p11_p7 = scmp.ge.s32.totalorder %s14_s14, 4   ;;  %s2584_s13 = smov %s2586_s16 }
 0x19e   :  { %13 = sbr.rel (!%p11_p7) target bundleno = 2 (0x2), region = 74 }
 0x1a5   :  { %1729 = vsyncpa [#allocation4], 1 }
 0x1a6   :  { %1731 = vsyncpa [#allocation4 + $0x1], 1 }

</bundles_post_ra>
